<compile_context>
chip_gen: v6e
topology: v6e:2x2x1
jax: 0.10.0
libtpu: 0.0.40
codegen_flags: <defaults>
</compile_context>

<pallas_src>
import numpy as np
import jax
import jax.numpy as jnp
from jax import lax
from jax.experimental import pallas as pl
from jax.experimental.pallas import tpu as pltpu

EPS = 1e-5


# ----------------------------------------------------------------------------
# generation-aware sizing helpers
# ----------------------------------------------------------------------------
def _pad_granularity() -> int:
    """Feature-axis pad/tile granularity: 256 on 2x256-MXU chips (v6e/v7x),
    128 on 128-wide-MXU chips (v4/v5)."""
    try:
        kind = jax.devices()[0].device_kind.lower()
    except Exception:
        return 256
    return 128 if ("v4" in kind or "v5" in kind) else 256


def _pick_tile(dim: int, requested: int, gran: int) -> int:
    """Largest multiple of `gran` that divides `dim` and is <= requested."""
    t = min(requested, dim)
    t = max(gran, (t // gran) * gran)
    while dim % t:
        t -= gran
    return t


def _vmem_limit(bytes_needed: int) -> int:
    """2x headroom over statically-known buffer bytes; floor 16 MiB, cap 128 MiB."""
    return int(min(max(2 * bytes_needed, 16 * 2**20), 128 * 2**20))


# ----------------------------------------------------------------------------
# kernels
# ----------------------------------------------------------------------------
def _make_fc1_bn_relu_kernel(inv_n: float):
    def kernel(x_ref, w1_ref, g1_ref, be1_ref, h_ref):
        # fc1 on the MXU (bf16 operands, f32 accumulation).  Linear bias omitted:
        # exactly cancelled by the training-mode BN mean subtraction.
        h = jnp.dot(x_ref[...].astype(jnp.bfloat16), w1_ref[...],
                    preferred_element_type=jnp.float32)            # (N, tW) f32
        # Exact batch statistics for this feature tile (full batch resident).
        s = jnp.sum(h, axis=0, keepdims=True)
        ss = jnp.sum(h * h, axis=0, keepdims=True)
        mu = s * inv_n
        var = jnp.maximum(ss * inv_n - mu * mu, 0.0)                # clamp cancellation
        scale = g1_ref[...] * lax.rsqrt(var + EPS)                  # folded BN affine
        shift = be1_ref[...] - mu * scale
        h_ref[...] = jnp.maximum(h * scale + shift, 0.0).astype(h_ref.dtype)
    return kernel


def _make_fc2_bn_res_kernel(alpha: float, inv_n: float):
    def kernel(h_ref, w2_ref, g2_ref, be2_ref, x_ref, o_ref, acc_ref):
        k = pl.program_id(1)

        @pl.when(k == 0)
        def _():
            acc_ref[...] = jnp.zeros_like(acc_ref)

        # fc2: W-axis reduction into the f32 accumulator (bias omitted, same reason).
        acc_ref[...] += jnp.dot(h_ref[...], w2_ref[...],
                                preferred_element_type=jnp.float32)

        @pl.when(k == pl.num_programs(1) - 1)
        def _():
            y = acc_ref[...]
            s = jnp.sum(y, axis=0, keepdims=True)
            ss = jnp.sum(y * y, axis=0, keepdims=True)
            mu = s * inv_n
            var = jnp.maximum(ss * inv_n - mu * mu, 0.0)
            scale = g2_ref[...] * lax.rsqrt(var + EPS)
            y = y * scale + (be2_ref[...] - mu * scale)
            # Residual: read x at use site; skip the multiply when alpha == 1.
            if alpha == 1.0:
                o_ref[...] = x_ref[...] + y
            else:
                o_ref[...] = x_ref[...] + alpha * y
    return kernel


# ----------------------------------------------------------------------------
# forward wrappers
# ----------------------------------------------------------------------------
def pad_activations(x, dp):
    """Pad once at model entry to the lane-dense padded feature width."""
    return jnp.pad(x, ((0, 0), (0, dp - x.shape[1])))


def fcblock_forward_padded(x_pad, kp, alpha=1.0, tile_w=512, tile_d=512):
    """One FCBlock on lane-dense padded activations.

    x_pad: (N, Dp) f32, padded columns exactly zero.  Returns (N, Dp) in the
    same layout (padded columns stay exactly zero), so stacked blocks chain
    without per-block pad/slice HBM passes.
    """
    N, Dp = x_pad.shape
    Wp = kp["w1"].shape[1]
    gran = _pad_granularity()
    tW = _pick_tile(Wp, tile_w, gran)
    tD = _pick_tile(Dp, tile_d, gran)
    inv_n = 1.0 / N

    # ---- kernel 1: fc1 + bn1 + relu, tiled over the W feature axis ----------
    nb1 = 2 * (N * Dp * 4 + Dp * tW * 2 + 2 * 8 * tW * 4 + N * tW * 2)
    h = pl.pallas_call(
        _make_fc1_bn_relu_kernel(inv_n),
        out_shape=jax.ShapeDtypeStruct((N, Wp), jnp.bfloat16),
        grid=(Wp // tW,),
        in_specs=[
            pl.BlockSpec((N, Dp), lambda j: (0, 0)),      # x (resident)
            pl.BlockSpec((Dp, tW), lambda j: (0, j)),     # w1 tile (streamed)
            pl.BlockSpec((1, tW), lambda j: (0, j)),      # gamma1 tile
            pl.BlockSpec((1, tW), lambda j: (0, j)),      # beta1 tile
        ],
        out_specs=pl.BlockSpec((N, tW), lambda j: (0, j)),
        compiler_params=pltpu.CompilerParams(
            dimension_semantics=("parallel",),
            vmem_limit_bytes=_vmem_limit(nb1)),
        cost_estimate=pl.CostEstimate(
            flops=2 * N * Dp * Wp,
            transcendentals=Wp,
            bytes_accessed=N * Dp * 4 + Dp * Wp * 2 + 8 * Wp + N * Wp * 2),
    )(x_pad, kp["w1"], kp["g1"], kp["be1"])

    # ---- kernel 2: fc2 (W reduction) + bn2 + residual, tiled over D ----------
    nb2 = 2 * (N * tW * 2 + tW * tD * 2 + 2 * 8 * tD * 4 + 2 * N * tD * 4) + N * tD * 4
    out = pl.pallas_call(
        _make_fc2_bn_res_kernel(alpha, inv_n),
        out_shape=jax.ShapeDtypeStruct((N, Dp), x_pad.dtype),
        grid=(Dp // tD, Wp // tW),
        in_specs=[
            pl.BlockSpec((N, tW), lambda j, k: (0, k)),   # h tile
            pl.BlockSpec((tW, tD), lambda j, k: (k, j)),  # w2 tile (streamed)
            pl.BlockSpec((1, tD), lambda j, k: (0, j)),   # gamma2 tile
            pl.BlockSpec((1, tD), lambda j, k: (0, j)),   # beta2 tile
            pl.BlockSpec((N, tD), lambda j, k: (0, j)),   # x tile (residual)
        ],
        out_specs=pl.BlockSpec((N, tD), lambda j, k: (0, j)),
        scratch_shapes=[pltpu.VMEM((N, tD), jnp.float32)],
        compiler_params=pltpu.CompilerParams(
            dimension_semantics=("parallel", "arbitrary"),
            vmem_limit_bytes=_vmem_limit(nb2)),
        cost_estimate=pl.CostEstimate(
            flops=2 * N * Wp * Dp,
            transcendentals=Dp,
            bytes_accessed=N * Wp * 2 + Wp * Dp * 2 + 8 * Dp + 2 * N * Dp * 4),
    )(h, kp["w2"], kp["g2"], kp["be2"], x_pad)

    return out


def fcblock_forward(x, kp, alpha=1.0, tile_w=512, tile_d=512):
    """Convenience single-block wrapper (pads and slices around the padded path)."""
    N, D = x.shape
    Dp = kp["w1"].shape[0]
    x_pad = pad_activations(x, Dp)
    y = fcblock_forward_padded(x_pad, kp, alpha=alpha, tile_w=tile_w, tile_d=tile_d)
    return y[:, :D]


# ----------------------------------------------------------------------------
# parameters
# ----------------------------------------------------------------------------
def init_params(key, input_dim, width):
    """PyTorch-default-style init (Linear: U(+-1/sqrt(fan_in)); BN: gamma=1, beta=0).
    Linear weights stored pre-transposed as (in_features, out_features)."""
    k1, k2, k3, k4 = jax.random.split(key, 4)
    b1 = 1.0 / np.sqrt(input_dim)
    b2 = 1.0 / np.sqrt(width)
    return {
        "w1": jax.random.uniform(k1, (input_dim, width), jnp.float32, -b1, b1),
        "b1": jax.random.uniform(k2, (width,), jnp.float32, -b1, b1),
        "g1": jnp.ones((width,), jnp.float32),
        "be1": jnp.zeros((width,), jnp.float32),
        "w2": jax.random.uniform(k3, (width, input_dim), jnp.float32, -b2, b2),
        "b2": jax.random.uniform(k4, (input_dim,), jnp.float32, -b2, b2),
        "g2": jnp.ones((input_dim,), jnp.float32),
        "be2": jnp.zeros((input_dim,), jnp.float32),
    }


def prepare_kernel_params(params, gran=None):
    """Pad feature dims to the generation's MXU granularity, cast weights to bf16,
    drop the (BN-cancelled) fc biases.  Padded gamma columns are 0 so padded
    lanes stay exactly 0 through every block."""
    if gran is None:
        gran = _pad_granularity()
    D, W = params["w1"].shape
    Dp = pl.cdiv(D, gran) * gran
    Wp = pl.cdiv(W, gran) * gran

    def pad_mat(w, rows, cols):
        return jnp.pad(w, ((0, rows - w.shape[0]), (0, cols - w.shape[1])))

    def pad_row(v, cols):
        return jnp.pad(v.reshape(1, -1), ((0, 0), (0, cols - v.shape[0])))

    return {
        "w1": pad_mat(params["w1"], Dp, Wp).astype(jnp.bfloat16),
        "g1": pad_row(params["g1"], Wp),
        "be1": pad_row(params["be1"], Wp),
        "w2": pad_mat(params["w2"], Wp, Dp).astype(jnp.bfloat16),
        "g2": pad_row(params["g2"], Dp),
        "be2": pad_row(params["be2"], Dp),
    }


# ----------------------------------------------------------------------------
# references
# ----------------------------------------------------------------------------
def fcblock_reference_mirrored(x, kp, alpha=1.0):
    """Pure-JAX reference mirroring the kernel's exact precision choices."""
    N, D = x.shape
    Dp = kp["w1"].shape[0]
    inv_n = 1.0 / N
    xp = jnp.pad(x, ((0, 0), (0, Dp - D)))
    h = jnp.dot(xp.astype(jnp.bfloat16), kp["w1"], preferred_element_type=jnp.float32)
    mu1 = jnp.sum(h, 0, keepdims=True) * inv_n
    var1 = jnp.maximum(jnp.sum(h * h, 0, keepdims=True) * inv_n - mu1 * mu1, 0.0)
    s1 = kp["g1"] * lax.rsqrt(var1 + EPS)
    h = jnp.maximum(h * s1 + (kp["be1"] - mu1 * s1), 0.0).astype(jnp.bfloat16)
    y = jnp.dot(h, kp["w2"], preferred_element_type=jnp.float32)
    mu2 = jnp.sum(y, 0, keepdims=True) * inv_n
    var2 = jnp.maximum(jnp.sum(y * y, 0, keepdims=True) * inv_n - mu2 * mu2, 0.0)
    s2 = kp["g2"] * lax.rsqrt(var2 + EPS)
    y = y * s2 + (kp["be2"] - mu2 * s2)
    return (xp + alpha * y)[:, :D]


def fcblock_reference_exact(x, params, alpha=1.0):
    """Exact PyTorch-semantics f32 reference (training-mode BN, biases included)."""
    h = x @ params["w1"] + params["b1"]
    mu1 = jnp.mean(h, axis=0, keepdims=True)
    var1 = jnp.mean((h - mu1) ** 2, axis=0, keepdims=True)
    h = (h - mu1) / jnp.sqrt(var1 + EPS) * params["g1"] + params["be1"]
    h = jnp.maximum(h, 0.0)
    y = h @ params["w2"] + params["b2"]
    mu2 = jnp.mean(y, axis=0, keepdims=True)
    var2 = jnp.mean((y - mu2) ** 2, axis=0, keepdims=True)
    y = (y - mu2) / jnp.sqrt(var2 + EPS) * params["g2"] + params["be2"]
    return x + alpha * y


# ----------------------------------------------------------------------------
if __name__ == "__main__":
    key = jax.random.PRNGKey(0)
    k_x, k_p = jax.random.split(key)

    # Batch kept a multiple of 16 so the bf16 intermediate meets the (16,128) tile.
    # Do NOT zero-pad the batch axis: it would corrupt the BatchNorm statistics.
    batch, input_dim, width, alpha = 16, 32, 64, 1.0

    x = jax.random.normal(k_x, (batch, input_dim), jnp.float32)
    params = init_params(k_p, input_dim, width)
    kp = prepare_kernel_params(params)

    fwd = jax.jit(fcblock_forward, static_argnames=("alpha", "tile_w", "tile_d"))
    out = jax.block_until_ready(fwd(x, kp, alpha=alpha))

    # Tight check against a reference with identical precision choices.
    ref_m = fcblock_reference_mirrored(x, kp, alpha=alpha)
    np.testing.assert_allclose(np.asarray(out), np.asarray(ref_m), rtol=1e-5, atol=1e-5)

    # Loose check against the exact f32 PyTorch-semantics math (difference is
    # purely the bf16 matmul operands, amplified through two BatchNorms).
    ref_e = fcblock_reference_exact(x, params, alpha=alpha)
    np.testing.assert_allclose(np.asarray(out), np.asarray(ref_e), rtol=5e-2, atol=2e-1)

    # Stacked-block path: pad once at model entry, chain blocks in the padded
    # lane-dense layout (no per-block pad/slice HBM passes), slice once at exit.
    Dp = kp["w1"].shape[0]
    fwd_pad = jax.jit(fcblock_forward_padded, static_argnames=("alpha", "tile_w", "tile_d"))
    yp = pad_activations(x, Dp)
    for _ in range(2):
        yp = fwd_pad(yp, kp, alpha=alpha)
    yp = jax.block_until_ready(yp)
    ref_s = x
    for _ in range(2):
        ref_s = fcblock_reference_mirrored(ref_s, kp, alpha=alpha)
    np.testing.assert_allclose(np.asarray(yp[:, :input_dim]), np.asarray(ref_s),
                               rtol=1e-4, atol=1e-4)

    print("KERNEL_OK")
</pallas_src>

<mosaic_0001>
module attributes {stable_mosaic.version = 11 : i64} {
  func.func @kernel(%arg0: i32, %arg1: memref<16x256xf32, #tpu.memory_space<vmem>>, %arg2: memref<256x256xbf16, #tpu.memory_space<vmem>>, %arg3: memref<1x256xf32, #tpu.memory_space<vmem>>, %arg4: memref<1x256xf32, #tpu.memory_space<vmem>>, %arg5: memref<16x256xbf16, #tpu.memory_space<vmem>>) attributes {dimension_semantics = [#tpu.dimension_semantics<parallel>], iteration_bounds = array<i64: 1>, scalar_prefetch = 0 : i64, scratch_operands = 0 : i64, tpu.core_type = #tpu.core_type<tc>, window_params = [{pipeline_mode = #tpu.pipeline_mode<synchronous>, transform_indices = @transform_0, window_bounds = array<i64: 16, 256>}, {transform_indices = @transform_1, window_bounds = array<i64: 256, 256>}, {transform_indices = @transform_2, window_bounds = array<i64: 1, 256>}, {transform_indices = @transform_3, window_bounds = array<i64: 1, 256>}, {transform_indices = @transform_4, window_bounds = array<i64: 16, 256>}]} {
    %c0 = arith.constant 0 : index
    %c0_0 = arith.constant 0 : index
    %0 = vector.load %arg1[%c0, %c0_0] : memref<16x256xf32, #tpu.memory_space<vmem>>, vector<16x256xf32>
    %1 = arith.truncf %0 : vector<16x256xf32> to vector<16x256xbf16>
    %c0_1 = arith.constant 0 : index
    %c0_2 = arith.constant 0 : index
    %2 = vector.load %arg2[%c0_1, %c0_2] : memref<256x256xbf16, #tpu.memory_space<vmem>>, vector<256x256xbf16>
    %cst = arith.constant dense<0.000000e+00> : vector<16x256xf32>
    %3 = tpu.matmul %1, %2, %cst {dimension_numbers = #tpu.dot_dimension_numbers<[1], [0], [0], [1], [0, 0, 1, 1], [], []>} : vector<16x256xbf16>, vector<256x256xbf16>, vector<16x256xf32> -> vector<16x256xf32>
    %cst_3 = arith.constant dense<0.000000e+00> : vector<256xf32>
    %4 = vector.multi_reduction <add>, %3, %cst_3 [0] : vector<16x256xf32> to vector<256xf32>
    %5 = vector.shape_cast %4 : vector<256xf32> to vector<1x256xf32>
    %6 = arith.mulf %3, %3 : vector<16x256xf32>
    %cst_4 = arith.constant dense<0.000000e+00> : vector<256xf32>
    %7 = vector.multi_reduction <add>, %6, %cst_4 [0] : vector<16x256xf32> to vector<256xf32>
    %8 = vector.shape_cast %7 : vector<256xf32> to vector<1x256xf32>
    %cst_5 = arith.constant 6.250000e-02 : f32
    %9 = vector.broadcast %cst_5 : f32 to vector<1x256xf32>
    %10 = arith.mulf %5, %9 : vector<1x256xf32>
    %cst_6 = arith.constant 6.250000e-02 : f32
    %11 = vector.broadcast %cst_6 : f32 to vector<1x256xf32>
    %12 = arith.mulf %8, %11 : vector<1x256xf32>
    %13 = arith.mulf %10, %10 : vector<1x256xf32>
    %14 = arith.subf %12, %13 : vector<1x256xf32>
    %cst_7 = arith.constant 0.000000e+00 : f32
    %15 = vector.broadcast %cst_7 : f32 to vector<1x256xf32>
    %16 = arith.maximumf %14, %15 : vector<1x256xf32>
    %c0_8 = arith.constant 0 : index
    %c0_9 = arith.constant 0 : index
    %17 = vector.load %arg3[%c0_8, %c0_9] : memref<1x256xf32, #tpu.memory_space<vmem>>, vector<1x256xf32>
    %cst_10 = arith.constant 9.99999974E-6 : f32
    %18 = vector.broadcast %cst_10 : f32 to vector<1x256xf32>
    %19 = arith.addf %16, %18 : vector<1x256xf32>
    %20 = math.rsqrt %19 : vector<1x256xf32>
    %21 = arith.mulf %17, %20 : vector<1x256xf32>
    %c0_11 = arith.constant 0 : index
    %c0_12 = arith.constant 0 : index
    %22 = vector.load %arg4[%c0_11, %c0_12] : memref<1x256xf32, #tpu.memory_space<vmem>>, vector<1x256xf32>
    %23 = arith.mulf %10, %21 : vector<1x256xf32>
    %24 = arith.subf %22, %23 : vector<1x256xf32>
    %25 = vector.broadcast %21 : vector<1x256xf32> to vector<16x256xf32>
    %26 = arith.mulf %3, %25 : vector<16x256xf32>
    %27 = vector.broadcast %24 : vector<1x256xf32> to vector<16x256xf32>
    %28 = arith.addf %26, %27 : vector<16x256xf32>
    %cst_13 = arith.constant 0.000000e+00 : f32
    %29 = vector.broadcast %cst_13 : f32 to vector<16x256xf32>
    %30 = arith.maximumf %28, %29 : vector<16x256xf32>
    %31 = arith.truncf %30 : vector<16x256xf32> to vector<16x256xbf16>
    %c0_14 = arith.constant 0 : index
    %c0_15 = arith.constant 0 : index
    %32 = vector.load %arg5[%c0_14, %c0_15] : memref<16x256xbf16, #tpu.memory_space<vmem>>, vector<16x256xbf16>
    tpu.vector_store %arg5[%c0_14, %c0_15], %31 {strides = array<i32>} : memref<16x256xbf16, #tpu.memory_space<vmem>>, vector<16x256xbf16>,
    return
  }
  func.func @transform_0(%arg0: i32) -> (i32, i32) {
    %c0_i32 = arith.constant 0 : i32
    %c0_i32_0 = arith.constant 0 : i32
    %c0_i32_1 = arith.constant 0 : i32
    return %c0_i32, %c0_i32_0 : i32, i32
  }
  func.func @transform_1(%arg0: i32) -> (i32, i32) {
    %c0_i32 = arith.constant 0 : i32
    %c0_i32_0 = arith.constant 0 : i32
    return %c0_i32, %arg0 : i32, i32
  }
  func.func @transform_2(%arg0: i32) -> (i32, i32) {
    %c0_i32 = arith.constant 0 : i32
    %c0_i32_0 = arith.constant 0 : i32
    return %c0_i32, %arg0 : i32, i32
  }
  func.func @transform_3(%arg0: i32) -> (i32, i32) {
    %c0_i32 = arith.constant 0 : i32
    %c0_i32_0 = arith.constant 0 : i32
    return %c0_i32, %arg0 : i32, i32
  }
  func.func @transform_4(%arg0: i32) -> (i32, i32) {
    %c0_i32 = arith.constant 0 : i32
    %c0_i32_0 = arith.constant 0 : i32
    return %c0_i32, %arg0 : i32, i32
  }
}

module attributes {stable_mosaic.version = 11 : i64} {
  func.func @kernel(%arg0: i32, %arg1: i32, %arg2: memref<16x256xbf16, #tpu.memory_space<vmem>>, %arg3: memref<256x256xbf16, #tpu.memory_space<vmem>>, %arg4: memref<1x256xf32, #tpu.memory_space<vmem>>, %arg5: memref<1x256xf32, #tpu.memory_space<vmem>>, %arg6: memref<16x256xf32, #tpu.memory_space<vmem>>, %arg7: memref<16x256xf32, #tpu.memory_space<vmem>>, %arg8: memref<16x256xf32, #tpu.memory_space<vmem>>) attributes {dimension_semantics = [#tpu.dimension_semantics<parallel>, #tpu.dimension_semantics<arbitrary>], iteration_bounds = array<i64: 1, 1>, scalar_prefetch = 0 : i64, scratch_operands = 1 : i64, tpu.core_type = #tpu.core_type<tc>, window_params = [{transform_indices = @transform_0, window_bounds = array<i64: 16, 256>}, {transform_indices = @transform_1, window_bounds = array<i64: 256, 256>}, {transform_indices = @transform_2, window_bounds = array<i64: 1, 256>}, {transform_indices = @transform_3, window_bounds = array<i64: 1, 256>}, {transform_indices = @transform_4, window_bounds = array<i64: 16, 256>}, {transform_indices = @transform_5, window_bounds = array<i64: 16, 256>}]} {
    %c0_i32 = arith.constant 0 : i32
    %0 = arith.cmpi eq, %arg1, %c0_i32 : i32
    %1 = arith.extui %0 : i1 to i32
    %c0_i32_0 = arith.constant 0 : i32
    %2 = arith.cmpi ne, %1, %c0_i32_0 : i32
    scf.if %2 {
      %cst_10 = arith.constant 0.000000e+00 : f32
      %12 = vector.broadcast %cst_10 : f32 to vector<16x256xf32>
      %c0_11 = arith.constant 0 : index
      %c0_12 = arith.constant 0 : index
      %13 = vector.load %arg8[%c0_11, %c0_12] : memref<16x256xf32, #tpu.memory_space<vmem>>, vector<16x256xf32>
      tpu.vector_store %arg8[%c0_11, %c0_12], %12 {strides = array<i32>} : memref<16x256xf32, #tpu.memory_space<vmem>>, vector<16x256xf32>,
    } else {
    }
    %c0 = arith.constant 0 : index
    %c0_1 = arith.constant 0 : index
    %3 = vector.load %arg8[%c0, %c0_1] : memref<16x256xf32, #tpu.memory_space<vmem>>, vector<16x256xf32>
    %c0_2 = arith.constant 0 : index
    %c0_3 = arith.constant 0 : index
    %4 = vector.load %arg2[%c0_2, %c0_3] : memref<16x256xbf16, #tpu.memory_space<vmem>>, vector<16x256xbf16>
    %c0_4 = arith.constant 0 : index
    %c0_5 = arith.constant 0 : index
    %5 = vector.load %arg3[%c0_4, %c0_5] : memref<256x256xbf16, #tpu.memory_space<vmem>>, vector<256x256xbf16>
    %cst = arith.constant dense<0.000000e+00> : vector<16x256xf32>
    %6 = tpu.matmul %4, %5, %cst {dimension_numbers = #tpu.dot_dimension_numbers<[1], [0], [0], [1], [0, 0, 1, 1], [], []>} : vector<16x256xbf16>, vector<256x256xbf16>, vector<16x256xf32> -> vector<16x256xf32>
    %7 = arith.addf %3, %6 : vector<16x256xf32>
    %c0_6 = arith.constant 0 : index
    %c0_7 = arith.constant 0 : index
    %8 = vector.load %arg8[%c0_6, %c0_7] : memref<16x256xf32, #tpu.memory_space<vmem>>, vector<16x256xf32>
    tpu.vector_store %arg8[%c0_6, %c0_7], %7 {strides = array<i32>} : memref<16x256xf32, #tpu.memory_space<vmem>>, vector<16x256xf32>,
    %c0_i32_8 = arith.constant 0 : i32
    %9 = arith.cmpi eq, %arg1, %c0_i32_8 : i32
    %10 = arith.extui %9 : i1 to i32
    %c0_i32_9 = arith.constant 0 : i32
    %11 = arith.cmpi ne, %10, %c0_i32_9 : i32
    scf.if %11 {
      %c0_10 = arith.constant 0 : index
      %c0_11 = arith.constant 0 : index
      %12 = vector.load %arg8[%c0_10, %c0_11] : memref<16x256xf32, #tpu.memory_space<vmem>>, vector<16x256xf32>
      %cst_12 = arith.constant dense<0.000000e+00> : vector<256xf32>
      %13 = vector.multi_reduction <add>, %12, %cst_12 [0] : vector<16x256xf32> to vector<256xf32>
      %14 = vector.shape_cast %13 : vector<256xf32> to vector<1x256xf32>
      %15 = arith.mulf %12, %12 : vector<16x256xf32>
      %cst_13 = arith.constant dense<0.000000e+00> : vector<256xf32>
      %16 = vector.multi_reduction <add>, %15, %cst_13 [0] : vector<16x256xf32> to vector<256xf32>
      %17 = vector.shape_cast %16 : vector<256xf32> to vector<1x256xf32>
      %cst_14 = arith.constant 6.250000e-02 : f32
      %18 = vector.broadcast %cst_14 : f32 to vector<1x256xf32>
      %19 = arith.mulf %14, %18 : vector<1x256xf32>
      %cst_15 = arith.constant 6.250000e-02 : f32
      %20 = vector.broadcast %cst_15 : f32 to vector<1x256xf32>
      %21 = arith.mulf %17, %20 : vector<1x256xf32>
      %22 = arith.mulf %19, %19 : vector<1x256xf32>
      %23 = arith.subf %21, %22 : vector<1x256xf32>
      %cst_16 = arith.constant 0.000000e+00 : f32
      %24 = vector.broadcast %cst_16 : f32 to vector<1x256xf32>
      %25 = arith.maximumf %23, %24 : vector<1x256xf32>
      %c0_17 = arith.constant 0 : index
      %c0_18 = arith.constant 0 : index
      %26 = vector.load %arg4[%c0_17, %c0_18] : memref<1x256xf32, #tpu.memory_space<vmem>>, vector<1x256xf32>
      %cst_19 = arith.constant 9.99999974E-6 : f32
      %27 = vector.broadcast %cst_19 : f32 to vector<1x256xf32>
      %28 = arith.addf %25, %27 : vector<1x256xf32>
      %29 = math.rsqrt %28 : vector<1x256xf32>
      %30 = arith.mulf %26, %29 : vector<1x256xf32>
      %31 = vector.broadcast %30 : vector<1x256xf32> to vector<16x256xf32>
      %32 = arith.mulf %12, %31 : vector<16x256xf32>
      %c0_20 = arith.constant 0 : index
      %c0_21 = arith.constant 0 : index
      %33 = vector.load %arg5[%c0_20, %c0_21] : memref<1x256xf32, #tpu.memory_space<vmem>>, vector<1x256xf32>
      %34 = arith.mulf %19, %30 : vector<1x256xf32>
      %35 = arith.subf %33, %34 : vector<1x256xf32>
      %36 = vector.broadcast %35 : vector<1x256xf32> to vector<16x256xf32>
      %37 = arith.addf %32, %36 : vector<16x256xf32>
      %c0_22 = arith.constant 0 : index
      %c0_23 = arith.constant 0 : index
      %38 = vector.load %arg6[%c0_22, %c0_23] : memref<16x256xf32, #tpu.memory_space<vmem>>, vector<16x256xf32>
      %39 = arith.addf %38, %37 : vector<16x256xf32>
      %c0_24 = arith.constant 0 : index
      %c0_25 = arith.constant 0 : index
      %40 = vector.load %arg7[%c0_24, %c0_25] : memref<16x256xf32, #tpu.memory_space<vmem>>, vector<16x256xf32>
      tpu.vector_store %arg7[%c0_24, %c0_25], %39 {strides = array<i32>} : memref<16x256xf32, #tpu.memory_space<vmem>>, vector<16x256xf32>,
    } else {
    }
    return
  }
  func.func @transform_0(%arg0: i32, %arg1: i32) -> (i32, i32) {
    %c0_i32 = arith.constant 0 : i32
    %c0_i32_0 = arith.constant 0 : i32
    return %c0_i32, %arg1 : i32, i32
  }
  func.func @transform_1(%arg0: i32, %arg1: i32) -> (i32, i32) {
    %c0_i32 = arith.constant 0 : i32
    return %arg1, %arg0 : i32, i32
  }
  func.func @transform_2(%arg0: i32, %arg1: i32) -> (i32, i32) {
    %c0_i32 = arith.constant 0 : i32
    %c0_i32_0 = arith.constant 0 : i32
    return %c0_i32, %arg0 : i32, i32
  }
  func.func @transform_3(%arg0: i32, %arg1: i32) -> (i32, i32) {
    %c0_i32 = arith.constant 0 : i32
    %c0_i32_0 = arith.constant 0 : i32
    return %c0_i32, %arg0 : i32, i32
  }
  func.func @transform_4(%arg0: i32, %arg1: i32) -> (i32, i32) {
    %c0_i32 = arith.constant 0 : i32
    %c0_i32_0 = arith.constant 0 : i32
    return %c0_i32, %arg0 : i32, i32
  }
  func.func @transform_5(%arg0: i32, %arg1: i32) -> (i32, i32) {
    %c0_i32 = arith.constant 0 : i32
    %c0_i32_0 = arith.constant 0 : i32
    return %c0_i32, %arg0 : i32, i32
  }
}

</mosaic_0001>

<bundles_post_ra>
// kernel: fcblock_forward.2
= control target key start
LH: loop header
LB: loop body
LE: loop exit
PB: predicated region body
PF: predicated region fallthrough
CT: control target
= control target key end

     0   :  { %9 = vsyncpa [#allocation3], 0  ;;  %s677_s0 = inlined_call_operand.vmem [shape: f32[16,256], index: 0, kind: input, shape index: {}]   ;;  %s678_s1 = inlined_call_operand.hbm [shape: bf16[256,256], index: 1, kind: input, shape index: {}]   ;;  %s679_s2 = inlined_call_operand.hbm [shape: f32[1,256], index: 2, kind: input, shape index: {}]   ;;  %s680_s3 = inlined_call_operand.hbm [shape: f32[1,256], index: 3, kind: input, shape index: {}]   ;;  %s681_s4 = inlined_call_operand.vmem [shape: bf16[16,256], index: 4, kind: output, shape index: {}]  }
   0x1   :  { %10 = vsyncpa [#allocation5], 0  ;;  %s595_s15 = smov [#allocation4]   ;;  %s596_s17 = smov [#allocation2]  }
   0x2   :  { %s31_s16 = sshll.u32 %s595_s15, 4  ;;  %s18_s18 = sshll.u32 %s596_s17, 4  ;;  %s32_s16 = int_to_ptr.vmem [resolvable:$true] %s31_s16  ;;  %s19_s18 = int_to_ptr.vmem [resolvable:$true] %s18_s18 }
   0x3   :  { %s539_s19 = scalar_lea.vmem %s32_s16, 32  ;;  %p544_p1 = scmp.lt.s32.totalorder %s32_s16, %s32_s16 }
   0x4   :  { %p540_p0 = scmp.ne.s32.totalorder %s32_s16, %s539_s19  ;;  %p545_p2 = scmp.lt.s32.totalorder %s539_s19, %s539_s19 }
   0x6   :  { %p546_p3 = por %p545_p2, %p544_p1 }
   0x8   :  { %p547_p4 = pnand %p546_p3, %p540_p0 }
   0xa   :  { %550 = shalt.err (!%p547_p4)
}
   0xb   :  { %34 = dma.hbm_to_vmem [thread:$0]  %s679_s2, 32, %s32_s16, [#allocation5]  }
   0xc   :  { %s559_s22 = scalar_lea.vmem %s19_s18, 4096  ;;  %p564_p6 = scmp.lt.s32.totalorder %s19_s18, %s19_s18 }
   0xd   :  { %p560_p5 = scmp.ne.s32.totalorder %s19_s18, %s559_s22  ;;  %p565_p7 = scmp.lt.s32.totalorder %s559_s22, %s559_s22 }
   0xf   :  { %p566_p8 = por %p565_p7, %p564_p6 }
  0x11   :  { %p567_p9 = pnand %p566_p8, %p560_p5 }
  0x13   :  { %570 = shalt.err (!%p567_p9)
}
  0x14   :  { %s597_s23 = smov 128   ;;  %s598_s24 = smov 8  }
  0x15   :  { %24 = dma.hbm_to_vmem [thread:$0]  %s678_s1, 4096, %s19_s18, [#allocation3], %s597_s23, %s597_s23, %s598_s24  }
  0x16   :  { %s599_s27 = smov [#allocation6]  }
  0x17   :  { %s41_s28 = sshll.u32 %s599_s27, 4  ;;  %s42_s28 = int_to_ptr.vmem [resolvable:$true] %s41_s28 }
  0x18   :  { %s579_s29 = scalar_lea.vmem %s42_s28, 32  ;;  %p584_p11 = scmp.lt.s32.totalorder %s42_s28, %s42_s28 }
  0x19   :  { %p580_p10 = scmp.ne.s32.totalorder %s42_s28, %s579_s29  ;;  %p585_p12 = scmp.lt.s32.totalorder %s579_s29, %s579_s29 }
  0x1b   :  { %p586_p13 = por %p585_p12, %p584_p11 }
  0x1d   :  { %p587_p0 = pnand %p586_p13, %p580_p10 }
  0x1f   :  { %590 = shalt.err (!%p587_p0)
}
  0x20   :  { %44 = dma.hbm_to_vmem [thread:$0]  %s680_s3, 32, %s42_s28, [#allocation5]  }
  0x21   :  { %591 = dma.done.wait [#allocation3], 4096  }
  0x22   :  { %592 = vsyncadd [#allocation3], 4294963200 }
  0x23   :  { %593 = dma.done.wait [#allocation5], 64  }
  0x24   :  { %594 = vsyncadd [#allocation5], 4294967232  ;;  %v479_v0 = vld [vmem:[#allocation2 + $0x74] ss:$8 sps:$4 sm:$0xff]   ;;  %v481_v1 = vld [vmem:[#allocation2 + $0x70] ss:$8 sps:$4 sm:$0xff]  }
  0x25   :  { %252 = vmatprep.subr.bf16.mxu0 %v479_v0  ;;  %v482_v2 = vld [vmem:[#allocation2 + $0x64] ss:$8 sps:$4 sm:$0xff]   ;;  %v484_v3 = vld [vmem:[#allocation2 + $0x60] ss:$8 sps:$4 sm:$0xff]   ;;  %v485_v4 = vld [vmem:[#allocation2 + $0x54] ss:$8 sps:$4 sm:$0xff]  }
  0x26   :  { %253 = vmatpush1.bf16.msra.mxu0 %v481_v1  ;;  %v487_v5 = vld [vmem:[#allocation2 + $0x50] ss:$8 sps:$4 sm:$0xff]   ;;  %v488_v6 = vld [vmem:[#allocation2 + $0x44] ss:$8 sps:$4 sm:$0xff]   ;;  %v490_v7 = vld [vmem:[#allocation2 + $0x40] ss:$8 sps:$4 sm:$0xff]  }
  0x27   :  { %254 = vmatprep.subr.bf16.mxu0 %v482_v2  ;;  %v491_v8 = vld [vmem:[#allocation2 + $0x34] ss:$8 sps:$4 sm:$0xff]   ;;  %v493_v9 = vld [vmem:[#allocation2 + $0x30] ss:$8 sps:$4 sm:$0xff]   ;;  %v494_v10 = vld [vmem:[#allocation2 + $0x24] ss:$8 sps:$4 sm:$0xff]  }
  0x28   :  { %v496_v11 = vld [vmem:[#allocation2 + $0x20] ss:$8 sps:$4 sm:$0xff]   ;;  %v497_v12 = vld [vmem:[#allocation2 + $0x14] ss:$8 sps:$4 sm:$0xff]   ;;  %v499_v16 = vld [vmem:[#allocation2 + $0x10] ss:$8 sps:$4 sm:$0xff]  }
  0x29   :  { %v55_v13 = vld [vmem:[%s677_s0 + $0x8] sm:$0xff]  ;;  %v57_v14 = vld [vmem:[%s677_s0 + $0x18] sm:$0xff]  ;;  %v54_v35 = vld [vmem:[%s677_s0] sm:$0xff] }
  0x2a   :  { %255 = vmatpush1.bf16.msra.mxu0 %v484_v3  ;;  %v59_v15 = vpack.c.bf16 %v57_v14, %v55_v13  ;;  %v500_v17 = vld [vmem:[#allocation2 + $0x4] ss:$8 sps:$4 sm:$0xff]   ;;  %v502_v18 = vld [vmem:[#allocation2] ss:$8 sps:$4 sm:$0xff]   ;;  %v503_v19 = vld [vmem:[#allocation2 + $0xf4] ss:$8 sps:$4 sm:$0xff]  }
  0x2b   :  { %256 = vmatprep.subr.bf16.mxu0 %v485_v4  ;;  %v505_v20 = vld [vmem:[#allocation2 + $0xf0] ss:$8 sps:$4 sm:$0xff]   ;;  %v506_v21 = vld [vmem:[#allocation2 + $0xe4] ss:$8 sps:$4 sm:$0xff]   ;;  %v508_v22 = vld [vmem:[#allocation2 + $0xe0] ss:$8 sps:$4 sm:$0xff]  }
  0x2c   :  { %284 = vmatprep.mubr.bf16.mxu0 %v59_v15  ;;  %v509_v23 = vld [vmem:[#allocation2 + $0xd4] ss:$8 sps:$4 sm:$0xff]   ;;  %v511_v24 = vld [vmem:[#allocation2 + $0xd0] ss:$8 sps:$4 sm:$0xff]   ;;  %v512_v25 = vld [vmem:[#allocation2 + $0xc4] ss:$8 sps:$4 sm:$0xff]  }
  0x2d   :  { %v514_v26 = vld [vmem:[#allocation2 + $0xc0] ss:$8 sps:$4 sm:$0xff]   ;;  %v515_v27 = vld [vmem:[#allocation2 + $0xb4] ss:$8 sps:$4 sm:$0xff]   ;;  %v517_v28 = vld [vmem:[#allocation2 + $0xb0] ss:$8 sps:$4 sm:$0xff]  }
  0x2e   :  { %257 = vmatpush1.bf16.msra.mxu0 %v487_v5  ;;  %v518_v29 = vld [vmem:[#allocation2 + $0xa4] ss:$8 sps:$4 sm:$0xff]   ;;  %v520_v30 = vld [vmem:[#allocation2 + $0xa0] ss:$8 sps:$4 sm:$0xff]   ;;  %v521_v31 = vld [vmem:[#allocation2 + $0x94] ss:$8 sps:$4 sm:$0xff]  }
  0x2f   :  { %258 = vmatprep.subr.bf16.mxu0 %v488_v6  ;;  %v523_v32 = vld [vmem:[#allocation2 + $0x90] ss:$8 sps:$4 sm:$0xff]   ;;  %v524_v33 = vld [vmem:[#allocation2 + $0x84] ss:$8 sps:$4 sm:$0xff]   ;;  %v526_v34 = vld [vmem:[#allocation2 + $0x80] ss:$8 sps:$4 sm:$0xff]  }
  0x30   :  { %v56_v36 = vld [vmem:[%s677_s0 + $0x10] sm:$0xff] }
  0x31   :  { %v58_v37 = vpack.c.bf16 %v56_v36, %v54_v35 }
  0x32   :  { %259 = vmatpush1.bf16.msra.mxu0 %v490_v7 }
  0x33   :  { %260 = vmatprep.subr.bf16.mxu0 %v491_v8 }
  0x36   :  { %261 = vmatpush1.bf16.msra.mxu0 %v493_v9 }
  0x37   :  { %262 = vmatprep.subr.bf16.mxu0 %v494_v10 }
  0x3a   :  { %263 = vmatpush1.bf16.msra.mxu0 %v496_v11 }
  0x3b   :  { %264 = vmatprep.subr.bf16.mxu0 %v497_v12 }
  0x3e   :  { %265 = vmatpush1.bf16.msra.mxu0 %v499_v16 }
  0x3f   :  { %266 = vmatprep.subr.bf16.mxu0 %v500_v17 }
  0x42   :  { %267 = vmatpush1.bf16.msra.mxu0 %v502_v18 }
  0x43   :  { %268 = vmatprep.subr.bf16.mxu0 %v503_v19 }
  0x46   :  { %269 = vmatpush2.bf16.msra.mxu0 %v505_v20 }
  0x47   :  { %270 = vmatprep.subr.bf16.mxu0 %v506_v21 }
  0x4a   :  { %271 = vmatpush2.bf16.msra.mxu0 %v508_v22  ;;  %v600_v22 = vmov 1966171168  }
  0x4b   :  { %272 = vmatprep.subr.bf16.mxu0 %v509_v23  ;;  %v346_v23 = vunpack.c.l.s4 %v600_v22 }
  0x4e   :  { %273 = vmatpush2.bf16.msra.mxu0 %v511_v24  ;;  %v348_v24 = vlaneseq }
  0x4f   :  { %274 = vmatprep.subr.bf16.mxu0 %v512_v25  ;;  %v347_v25 = vunpack.c.0.s8 %v346_v23 }
  0x52   :  { %275 = vmatpush2.bf16.msra.mxu0 %v514_v26  ;;  %v349_v26 = vshrl.u32 %v348_v24, 7 }
  0x53   :  { %276 = vmatprep.subr.bf16.mxu0 %v515_v27 }
  0x54   :  { %v369_v35 = vsub.s32 1, %v349_v26 }
  0x56   :  { %277 = vmatpush2.bf16.msra.mxu0 %v517_v28  ;;  %v350_v28 = vsub.s32 %v347_v25, %v349_v26 }
  0x57   :  { %278 = vmatprep.subr.bf16.mxu0 %v518_v29 }
  0x5a   :  { %279 = vmatpush2.bf16.msra.mxu0 %v520_v30 }
  0x5b   :  { %280 = vmatprep.subr.bf16.mxu0 %v521_v31 }
  0x5e   :  { %281 = vmatpush2.bf16.msra.mxu0 %v523_v32  ;;  %v337_v32 = vld [vmem:[#allocation4] sm:$0x3] }
  0x5f   :  { %282 = vmatprep.subr.bf16.mxu0 %v524_v33 }
  0x62   :  { %283 = vmatpush2.bf16.msra.mxu0 %v526_v34  ;;  %v365_v34 = vsub.s32 0, %v349_v26 }
  0x65   :  { %285 = vmatmul.mubr.bf16.vlgmr.msra.gmra.mxu0 %v58_v37 }
 0x125   :  { %v647_v38 = vpop.f32.mrf.mxu0 }
 0x126   :  { %v309_v41 = vmul.f32 %v647_v38, %v647_v38 }
 0x127   :  { %v649_v39 = vpop.f32.mrf.mxu0 }
 0x128   :  { %v310_v44 = vmul.f32 %v649_v39, %v649_v39 }
 0x129   :  { %v651_v40 = vpop.f32.mrf.mxu0 }
 0x12a   :  { %v295_v42 = vadd.f32 %v651_v40, %v647_v38  ;;  %v311_v43 = vmul.f32 %v651_v40, %v651_v40 }
 0x12b   :  { %v661_v45 = vpop.f32.mrf.mxu0 }
 0x12c   :  { %v296_v46 = vrot.slane %v295_v42, 4  ;;  %v313_v47 = vadd.f32 %v311_v43, %v309_v41  ;;  %v302_v48 = vadd.f32 %v661_v45, %v649_v39  ;;  %v312_v49 = vmul.f32 %v661_v45, %v661_v45 }
 0x12e   :  { %v297_v50 = vadd.f32 %v296_v46, %v295_v42  ;;  %v314_v51 = vrot.slane %v313_v47, 4  ;;  %v303_v52 = vrot.slane %v302_v48, 4  ;;  %v320_v53 = vadd.f32 %v312_v49, %v310_v44 }
 0x130   :  { %v298_v54 = vrot.slane %v297_v50, 2  ;;  %v315_v55 = vadd.f32 %v314_v51, %v313_v47  ;;  %v304_v56 = vadd.f32 %v303_v52, %v302_v48  ;;  %v321_v57 = vrot.slane %v320_v53, 4  ;;  %v361_v47 = vld [vmem:[#allocation6] sm:$0x3] }
 0x132   :  { %v299_v58 = vadd.f32 %v298_v54, %v297_v50  ;;  %v316_v59 = vrot.slane %v315_v55, 2  ;;  %v305_v60 = vrot.slane %v304_v56, 2  ;;  %v322_v61 = vadd.f32 %v321_v57, %v320_v53 }
 0x134   :  { %v300_v62 = vrot.slane %v299_v58, 1  ;;  %v317_v63 = vadd.f32 %v316_v59, %v315_v55  ;;  %v306_v0 = vadd.f32 %v305_v60, %v304_v56  ;;  %v323_v1 = vrot.slane %v322_v61, 2 }
 0x136   :  { %v301_v2 = vadd.f32 %v300_v62, %v299_v58  ;;  %v318_v3 = vrot.slane %v317_v63, 1  ;;  %v307_v4 = vrot.slane %v306_v0, 1  ;;  %v324_v5 = vadd.f32 %v323_v1, %v322_v61 }
 0x138   :  { %v319_v6 = vadd.f32 %v318_v3, %v317_v63  ;;  %v327_v7 = vmul.f32 0.0625, %v301_v2  ;;  %v308_v8 = vadd.f32 %v307_v4, %v306_v0  ;;  %v325_v9 = vrot.slane %v324_v5, 1 }
 0x13a   :  { %v329_v10 = vmul.f32 0.0625, %v319_v6  ;;  %v331_v11 = vmul.f32 %v327_v7, %v327_v7  ;;  %v326_v12 = vadd.f32 %v325_v9, %v324_v5  ;;  %v328_v13 = vmul.f32 0.0625, %v308_v8 }
 0x13c   :  { %v333_v14 = vsub.f32 %v329_v10, %v331_v11  ;;  %v330_v15 = vmul.f32 0.0625, %v326_v12  ;;  %v332_v16 = vmul.f32 %v328_v13, %v328_v13 }
 0x13e   :  { %v335_v17 = vmax.f32 %v333_v14, 0.0  ;;  %v334_v18 = vsub.f32 %v330_v15, %v332_v16 }
 0x140   :  { %v338_v19 = vadd.f32 1e-05, %v335_v17  ;;  %v336_v20 = vmax.f32 %v334_v18, 0.0 }
 0x142   :  { %v339_v21 = vadd.f32 1e-05, %v336_v20  ;;  %527 = vrsqrt.f32 %v338_v19 }
 0x144   :  { %529 = vrsqrt.f32 %v339_v21 }
 0x14f   :  { %v528_v27 = vpop.eup %527 }
 0x151   :  { %v530_v29 = vpop.eup %529 }
 0x152   :  { %v344_v30 = vcombine.low %v528_v27, %v530_v29 }
 0x154   :  { %v351_v31 = vrot.slane %v344_v30, %v350_v28 }
 0x156   :  { %v358_v33 = vrot.slane %v351_v31, %v350_v28 }
 0x158   :  { %v360_v36 = vmul.f32 %v358_v33, %v337_v32 }
 0x15a   :  { %v366_v37 = vrot.slane %v360_v36, %v365_v34  ;;  %v370_v41 = vrot.slane %v360_v36, %v369_v35 }
 0x15c   :  { %v373_v42 = vmul.f32 %v366_v37, %v327_v7  ;;  %v374_v43 = vmul.f32 %v370_v41, %v328_v13  ;;  %v394_v50 = vmul.f32 %v366_v37, %v647_v38  ;;  %v395_v51 = vmul.f32 %v370_v41, %v649_v39 }
 0x15d   :  { %v396_v52 = vmul.f32 %v366_v37, %v651_v40  ;;  %v397_v53 = vmul.f32 %v370_v41, %v661_v45 }
 0x15e   :  { %v377_v44 = vcombine.low %v373_v42, %v374_v43 }
 0x160   :  { %v384_v46 = vrot.slane %v377_v44, %v350_v28 }
 0x162   :  { %v391_v48 = vrot.slane %v384_v46, %v350_v28 }
 0x164   :  { %v393_v49 = vsub.f32 %v361_v47, %v391_v48 }
 0x166   :  { %v402_v54 = vrot.slane %v393_v49, %v365_v34  ;;  %v406_v55 = vrot.slane %v393_v49, %v369_v35 }
 0x168   :  { %v409_v56 = vadd.f32 %v402_v54, %v394_v50  ;;  %v410_v57 = vadd.f32 %v406_v55, %v395_v51  ;;  %v411_v58 = vadd.f32 %v402_v54, %v396_v52  ;;  %v412_v59 = vadd.f32 %v406_v55, %v397_v53 }
 0x16a   :  { %v413_v60 = vmax.f32 %v409_v56, 0.0  ;;  %v414_v61 = vmax.f32 %v410_v57, 0.0  ;;  %v415_v62 = vmax.f32 %v411_v58, 0.0  ;;  %v416_v63 = vmax.f32 %v412_v59, 0.0 }
 0x16c   :  { %v471_v0 = vpack.c.bf16 %v414_v61, %v413_v60  ;;  %v472_v1 = vpack.c.bf16 %v416_v63, %v415_v62 }
 0x16e   :  { %429 = vst [vmem:[%s681_s4] sm:$0xff] %v471_v0  ;;  %430 = vst [vmem:[%s681_s4 + $0x8] sm:$0xff] %v472_v1 }
 0x16f   :  { %435 = vsyncpa [#allocation3], 1 }
 0x170   :  { %436 = vsyncpa [#allocation5], 1 }

// kernel: fcblock_forward.3
= control target key start
LH: loop header
LB: loop body
LE: loop exit
PB: predicated region body
PF: predicated region fallthrough
CT: control target
= control target key end

     0   :  { %s705_s1 = inlined_call_operand.vmem [shape: bf16[256,256], index: 1, kind: input, shape index: {}]   ;;  %s706_s0 = inlined_call_operand.vmem [shape: bf16[16,256], index: 0, kind: input, shape index: {}]   ;;  %s707_s2 = inlined_call_operand.vmem [shape: f32[1,256], index: 2, kind: input, shape index: {}]   ;;  %s708_s3 = inlined_call_operand.vmem [shape: f32[1,256], index: 3, kind: input, shape index: {}]   ;;  %s709_s4 = inlined_call_operand.vmem [shape: f32[16,256], index: 4, kind: input, shape index: {}]   ;;  %s710_s5 = inlined_call_operand.vmem [shape: f32[16,256], index: 5, kind: output, shape index: {}]  }
   0x1   :  { %v463_v0 = vld [vmem:[%s705_s1 + $0x74] ss:$8 sps:$4 sm:$0xff]   ;;  %v465_v1 = vld [vmem:[%s705_s1 + $0x70] ss:$8 sps:$4 sm:$0xff]   ;;  %v466_v2 = vld [vmem:[%s705_s1 + $0x64] ss:$8 sps:$4 sm:$0xff]  }
   0x2   :  { %236 = vmatprep.subr.bf16.mxu0 %v463_v0  ;;  %v468_v3 = vld [vmem:[%s705_s1 + $0x60] ss:$8 sps:$4 sm:$0xff]   ;;  %v469_v4 = vld [vmem:[%s705_s1 + $0x54] ss:$8 sps:$4 sm:$0xff]   ;;  %v471_v5 = vld [vmem:[%s705_s1 + $0x50] ss:$8 sps:$4 sm:$0xff]  }
   0x3   :  { %237 = vmatpush1.bf16.msra.mxu0 %v465_v1  ;;  %v472_v6 = vld [vmem:[%s705_s1 + $0x44] ss:$8 sps:$4 sm:$0xff]   ;;  %v474_v7 = vld [vmem:[%s705_s1 + $0x40] ss:$8 sps:$4 sm:$0xff]   ;;  %v475_v8 = vld [vmem:[%s705_s1 + $0x34] ss:$8 sps:$4 sm:$0xff]  }
   0x4   :  { %238 = vmatprep.subr.bf16.mxu0 %v466_v2  ;;  %v477_v9 = vld [vmem:[%s705_s1 + $0x30] ss:$8 sps:$4 sm:$0xff]   ;;  %v478_v10 = vld [vmem:[%s705_s1 + $0x24] ss:$8 sps:$4 sm:$0xff]   ;;  %v480_v11 = vld [vmem:[%s705_s1 + $0x20] ss:$8 sps:$4 sm:$0xff]  }
   0x5   :  { %v481_v12 = vld [vmem:[%s705_s1 + $0x14] ss:$8 sps:$4 sm:$0xff]   ;;  %v513_v13 = vld [vmem:[%s706_s0 + $0x4] ss:$8 sps:$4 sm:$0xff]   ;;  %v483_v14 = vld [vmem:[%s705_s1 + $0x10] ss:$8 sps:$4 sm:$0xff]  }
   0x6   :  { %v484_v15 = vld [vmem:[%s705_s1 + $0x4] ss:$8 sps:$4 sm:$0xff]   ;;  %268 = vmatprep.mubr.bf16.mxu0 %v513_v13  ;;  %v486_v16 = vld [vmem:[%s705_s1] ss:$8 sps:$4 sm:$0xff]   ;;  %v487_v17 = vld [vmem:[%s705_s1 + $0xf4] ss:$8 sps:$4 sm:$0xff]  }
   0x7   :  { %239 = vmatpush1.bf16.msra.mxu0 %v468_v3  ;;  %v489_v18 = vld [vmem:[%s705_s1 + $0xf0] ss:$8 sps:$4 sm:$0xff]   ;;  %v490_v19 = vld [vmem:[%s705_s1 + $0xe4] ss:$8 sps:$4 sm:$0xff]   ;;  %v492_v20 = vld [vmem:[%s705_s1 + $0xe0] ss:$8 sps:$4 sm:$0xff]  }
   0x8   :  { %240 = vmatprep.subr.bf16.mxu0 %v469_v4  ;;  %v493_v21 = vld [vmem:[%s705_s1 + $0xd4] ss:$8 sps:$4 sm:$0xff]   ;;  %v495_v22 = vld [vmem:[%s705_s1 + $0xd0] ss:$8 sps:$4 sm:$0xff]   ;;  %v496_v23 = vld [vmem:[%s705_s1 + $0xc4] ss:$8 sps:$4 sm:$0xff]  }
   0x9   :  { %v498_v24 = vld [vmem:[%s705_s1 + $0xc0] ss:$8 sps:$4 sm:$0xff]   ;;  %v499_v25 = vld [vmem:[%s705_s1 + $0xb4] ss:$8 sps:$4 sm:$0xff]   ;;  %v501_v26 = vld [vmem:[%s705_s1 + $0xb0] ss:$8 sps:$4 sm:$0xff]  }
   0xa   :  { %v502_v27 = vld [vmem:[%s705_s1 + $0xa4] ss:$8 sps:$4 sm:$0xff]   ;;  %v504_v28 = vld [vmem:[%s705_s1 + $0xa0] ss:$8 sps:$4 sm:$0xff]   ;;  %v505_v29 = vld [vmem:[%s705_s1 + $0x94] ss:$8 sps:$4 sm:$0xff]  }
   0xb   :  { %241 = vmatpush1.bf16.msra.mxu0 %v471_v5  ;;  %v507_v30 = vld [vmem:[%s705_s1 + $0x90] ss:$8 sps:$4 sm:$0xff]   ;;  %v508_v31 = vld [vmem:[%s705_s1 + $0x84] ss:$8 sps:$4 sm:$0xff]   ;;  %v510_v32 = vld [vmem:[%s705_s1 + $0x80] ss:$8 sps:$4 sm:$0xff]  }
   0xc   :  { %242 = vmatprep.subr.bf16.mxu0 %v472_v6  ;;  %v511_v33 = vld [vmem:[%s706_s0] ss:$8 sps:$4 sm:$0xff]  }
   0xf   :  { %243 = vmatpush1.bf16.msra.mxu0 %v474_v7 }
  0x10   :  { %244 = vmatprep.subr.bf16.mxu0 %v475_v8 }
  0x13   :  { %245 = vmatpush1.bf16.msra.mxu0 %v477_v9 }
  0x14   :  { %246 = vmatprep.subr.bf16.mxu0 %v478_v10 }
  0x17   :  { %247 = vmatpush1.bf16.msra.mxu0 %v480_v11 }
  0x18   :  { %248 = vmatprep.subr.bf16.mxu0 %v481_v12 }
  0x1b   :  { %249 = vmatpush1.bf16.msra.mxu0 %v483_v14 }
  0x1c   :  { %250 = vmatprep.subr.bf16.mxu0 %v484_v15 }
  0x1f   :  { %251 = vmatpush1.bf16.msra.mxu0 %v486_v16 }
  0x20   :  { %252 = vmatprep.subr.bf16.mxu0 %v487_v17 }
  0x23   :  { %253 = vmatpush2.bf16.msra.mxu0 %v489_v18  ;;  %v518_v18 = vmov 1966171168  }
  0x24   :  { %254 = vmatprep.subr.bf16.mxu0 %v490_v19  ;;  %v345_v19 = vunpack.c.l.s4 %v518_v18 }
  0x27   :  { %255 = vmatpush2.bf16.msra.mxu0 %v492_v20  ;;  %v347_v20 = vlaneseq }
  0x28   :  { %256 = vmatprep.subr.bf16.mxu0 %v493_v21  ;;  %v346_v21 = vunpack.c.0.s8 %v345_v19 }
  0x2b   :  { %257 = vmatpush2.bf16.msra.mxu0 %v495_v22  ;;  %v348_v22 = vshrl.u32 %v347_v20, 7 }
  0x2c   :  { %258 = vmatprep.subr.bf16.mxu0 %v496_v23 }
  0x2f   :  { %259 = vmatpush2.bf16.msra.mxu0 %v498_v24  ;;  %v349_v24 = vsub.s32 %v346_v21, %v348_v22 }
  0x30   :  { %260 = vmatprep.subr.bf16.mxu0 %v499_v25 }
  0x33   :  { %261 = vmatpush2.bf16.msra.mxu0 %v501_v26 }
  0x34   :  { %262 = vmatprep.subr.bf16.mxu0 %v502_v27 }
  0x37   :  { %263 = vmatpush2.bf16.msra.mxu0 %v504_v28  ;;  %v336_v28 = vld [vmem:[%s707_s2] sm:$0x3] }
  0x38   :  { %264 = vmatprep.subr.bf16.mxu0 %v505_v29 }
  0x3b   :  { %265 = vmatpush2.bf16.msra.mxu0 %v507_v30  ;;  %v363_v30 = vsub.s32 0, %v348_v22 }
  0x3c   :  { %266 = vmatprep.subr.bf16.mxu0 %v508_v31  ;;  %v367_v31 = vsub.s32 1, %v348_v22 }
  0x3f   :  { %267 = vmatpush2.bf16.msra.mxu0 %v510_v32 }
  0x42   :  { %269 = vmatmul.mubr.bf16.vlgmr.msra.gmra.mxu0 %v511_v33 }
 0x102   :  { %v651_v34 = vpop.f32.mrf.mxu0 }
 0x103   :  { %v308_v37 = vmul.f32 %v651_v34, %v651_v34 }
 0x104   :  { %v653_v35 = vpop.f32.mrf.mxu0 }
 0x105   :  { %v309_v40 = vmul.f32 %v653_v35, %v653_v35 }
 0x106   :  { %v655_v36 = vpop.f32.mrf.mxu0 }
 0x107   :  { %v294_v38 = vadd.f32 %v655_v36, %v651_v34  ;;  %v310_v39 = vmul.f32 %v655_v36, %v655_v36 }
 0x108   :  { %v665_v41 = vpop.f32.mrf.mxu0 }
 0x109   :  { %v295_v42 = vrot.slane %v294_v38, 4  ;;  %v312_v43 = vadd.f32 %v310_v39, %v308_v37  ;;  %v301_v44 = vadd.f32 %v665_v41, %v653_v35  ;;  %v311_v45 = vmul.f32 %v665_v41, %v665_v41 }
 0x10b   :  { %v296_v46 = vadd.f32 %v295_v42, %v294_v38  ;;  %v313_v47 = vrot.slane %v312_v43, 4  ;;  %v302_v48 = vrot.slane %v301_v44, 4  ;;  %v319_v49 = vadd.f32 %v311_v45, %v309_v40 }
 0x10d   :  { %v297_v50 = vrot.slane %v296_v46, 2  ;;  %v314_v51 = vadd.f32 %v313_v47, %v312_v43  ;;  %v303_v52 = vadd.f32 %v302_v48, %v301_v44  ;;  %v320_v53 = vrot.slane %v319_v49, 4  ;;  %v375_v43 = vld [vmem:[%s708_s3] sm:$0x3] }
 0x10f   :  { %v298_v54 = vadd.f32 %v297_v50, %v296_v46  ;;  %v315_v55 = vrot.slane %v314_v51, 2  ;;  %v304_v56 = vrot.slane %v303_v52, 2  ;;  %v321_v57 = vadd.f32 %v320_v53, %v319_v49  ;;  %v413_v53 = vld [vmem:[%s709_s4 + $0x8] sm:$0xff] }
 0x111   :  { %v299_v58 = vrot.slane %v298_v54, 1  ;;  %v316_v59 = vadd.f32 %v315_v55, %v314_v51  ;;  %v305_v60 = vadd.f32 %v304_v56, %v303_v52  ;;  %v322_v61 = vrot.slane %v321_v57, 2  ;;  %v412_v52 = vld [vmem:[%s709_s4] sm:$0xff] }
 0x113   :  { %v300_v62 = vadd.f32 %v299_v58, %v298_v54  ;;  %v317_v63 = vrot.slane %v316_v59, 1  ;;  %v306_v0 = vrot.slane %v305_v60, 1  ;;  %v323_v1 = vadd.f32 %v322_v61, %v321_v57 }
 0x115   :  { %v318_v2 = vadd.f32 %v317_v63, %v316_v59  ;;  %v326_v3 = vmul.f32 0.0625, %v300_v62  ;;  %v307_v4 = vadd.f32 %v306_v0, %v305_v60  ;;  %v324_v5 = vrot.slane %v323_v1, 1 }
 0x117   :  { %v328_v6 = vmul.f32 0.0625, %v318_v2  ;;  %v330_v7 = vmul.f32 %v326_v3, %v326_v3  ;;  %v325_v8 = vadd.f32 %v324_v5, %v323_v1  ;;  %v327_v9 = vmul.f32 0.0625, %v307_v4 }
 0x119   :  { %v332_v10 = vsub.f32 %v328_v6, %v330_v7  ;;  %v329_v11 = vmul.f32 0.0625, %v325_v8  ;;  %v331_v12 = vmul.f32 %v327_v9, %v327_v9 }
 0x11b   :  { %v334_v13 = vmax.f32 %v332_v10, 0.0  ;;  %v333_v14 = vsub.f32 %v329_v11, %v331_v12 }
 0x11d   :  { %v337_v15 = vadd.f32 1e-05, %v334_v13  ;;  %v335_v16 = vmax.f32 %v333_v14, 0.0 }
 0x11f   :  { %v338_v17 = vadd.f32 1e-05, %v335_v16  ;;  %514 = vrsqrt.f32 %v337_v15 }
 0x121   :  { %516 = vrsqrt.f32 %v338_v17 }
 0x12c   :  { %v515_v23 = vpop.eup %514 }
 0x12e   :  { %v517_v25 = vpop.eup %516 }
 0x12f   :  { %v343_v26 = vcombine.low %v515_v23, %v517_v25 }
 0x131   :  { %v350_v27 = vrot.slane %v343_v26, %v349_v24 }
 0x133   :  { %v357_v29 = vrot.slane %v350_v27, %v349_v24 }
 0x135   :  { %v359_v32 = vmul.f32 %v357_v29, %v336_v28 }
 0x137   :  { %v364_v33 = vrot.slane %v359_v32, %v363_v30  ;;  %v368_v37 = vrot.slane %v359_v32, %v367_v31 }
 0x139   :  { %v376_v38 = vmul.f32 %v364_v33, %v326_v3  ;;  %v377_v39 = vmul.f32 %v368_v37, %v327_v9  ;;  %v371_v46 = vmul.f32 %v364_v33, %v651_v34  ;;  %v372_v47 = vmul.f32 %v368_v37, %v653_v35  ;;  %v414_v34 = vld [vmem:[%s709_s4 + $0x10] sm:$0xff]  ;;  %v415_v35 = vld [vmem:[%s709_s4 + $0x18] sm:$0xff] }
 0x13a   :  { %v373_v48 = vmul.f32 %v364_v33, %v655_v36  ;;  %v374_v49 = vmul.f32 %v368_v37, %v665_v41 }
 0x13b   :  { %v380_v40 = vcombine.low %v376_v38, %v377_v39 }
 0x13d   :  { %v387_v42 = vrot.slane %v380_v40, %v349_v24 }
 0x13f   :  { %v394_v44 = vrot.slane %v387_v42, %v349_v24 }
 0x141   :  { %v396_v45 = vsub.f32 %v375_v43, %v394_v44 }
 0x143   :  { %v401_v50 = vrot.slane %v396_v45, %v363_v30  ;;  %v405_v51 = vrot.slane %v396_v45, %v367_v31 }
 0x145   :  { %v408_v36 = vadd.f32 %v401_v50, %v371_v46  ;;  %v409_v41 = vadd.f32 %v405_v51, %v372_v47  ;;  %v410_v54 = vadd.f32 %v401_v50, %v373_v48  ;;  %v411_v55 = vadd.f32 %v405_v51, %v374_v49 }
 0x147   :  { %v416_v56 = vadd.f32 %v412_v52, %v408_v36  ;;  %v417_v57 = vadd.f32 %v413_v53, %v409_v41  ;;  %v418_v58 = vadd.f32 %v414_v34, %v410_v54  ;;  %v419_v59 = vadd.f32 %v415_v35, %v411_v55 }
 0x149   :  { %420 = vst [vmem:[%s710_s5] sm:$0xff] %v416_v56  ;;  %421 = vst [vmem:[%s710_s5 + $0x8] sm:$0xff] %v417_v57 }
 0x14a   :  { %422 = vst [vmem:[%s710_s5 + $0x10] sm:$0xff] %v418_v58  ;;  %423 = vst [vmem:[%s710_s5 + $0x18] sm:$0xff] %v419_v59 }

</bundles_post_ra>
